<compile_context>
chip_gen: v7x
topology: tpu7x:2x2x1
jax: 0.10.0
libtpu: 0.0.40
codegen_flags: <defaults>
</compile_context>

<pallas_src>
import jax
import jax.numpy as jnp
from jax.experimental import pallas as pl
from jax.experimental.pallas import tpu as pltpu


def _mix_kernel(coef_ref, bicub_ref, dh_ref, out_ref):
    # coef_ref: full (n_dh,) vector in SMEM; grid axis 0 = DH channel index.
    c = coef_ref[pl.program_id(0)]
    b = bicub_ref[...]
    # c*dh + (1-c)*bicub  ==  bicub + c*(dh - bicub)   (one fewer vmul)
    out_ref[...] = b + c * (dh_ref[...] - b)


def _pick_row_tile(H, W, itemsize, vmem_budget_bytes):
    """Largest H-tile s.t. 3 streams x 2 buffers fit the conservative budget."""
    bytes_per_row_per_stream = W * itemsize
    max_rows = vmem_budget_bytes // (bytes_per_row_per_stream * 3 * 2)
    if max_rows >= H:
        return H                      # whole plane in one block (small images)
    return max(8, (int(max_rows) // 8) * 8)   # keep sublane (8) alignment


def mix_channel_linear(x_tif, coefs, *, p=1.0, eps=0.0,
                       vmem_budget_bytes=12 * 1024 * 1024):
    """Pallas implementation of MixChannel_linear.forward.

    x_tif : (C, H, W) float32, C >= 7; first 6 channels are the bicubic bands,
            the remaining (C - 6) channels are the DH bands.
    coefs : (C - 6,) float32 per-channel blend coefficients.
    """
    assert x_tif.ndim == 3
    C, H, W = x_tif.shape
    n_dh = C - 6
    assert 1 <= n_dh <= 6, "l8_DH must pair with the first 6 bicubic bands"

    if not (p > eps):
        # PyTorch returns an undefined `res` in this branch; with p=1 and
        # eps in [0, 1) it is never taken.
        # TODO(synk): undefined-semantics branch of the reference is skipped.
        raise ValueError("p <= eps branch has undefined semantics in the reference")

    # NOTE: p/eps must be concrete Python floats (not traced values).

    coefs = coefs.astype(x_tif.dtype)

    itemsize = jnp.dtype(x_tif.dtype).itemsize
    th = _pick_row_tile(H, W, itemsize, vmem_budget_bytes)
    grid = (n_dh, pl.cdiv(H, th))

    out = pl.pallas_call(
        _mix_kernel,
        out_shape=jax.ShapeDtypeStruct((n_dh, H, W), x_tif.dtype),
        grid=grid,
        in_specs=[
            # coefs: whole (n_dh,) vector resident in SMEM.
            pl.BlockSpec(memory_space=pltpu.SMEM),
            # bicubic band i, row-tile h  (channel offset 0)
            pl.BlockSpec((1, th, W), lambda i, h: (i, h, 0)),
            # DH band i, row-tile h      (channel offset +6 folded into index_map)
            pl.BlockSpec((1, th, W), lambda i, h: (i + 6, h, 0)),
        ],
        out_specs=pl.BlockSpec((1, th, W), lambda i, h: (i, h, 0)),
        compiler_params=pltpu.CompilerParams(
            dimension_semantics=("parallel", "parallel")),
    )(coefs, x_tif, x_tif)
    return out


if __name__ == "__main__":
    key = jax.random.PRNGKey(0)
    k_x, k_eps, k_coef = jax.random.split(key, 3)

    C, H, W = 12, 16, 128          # 6 bicubic bands + 6 DH bands, small test
    x_tif = jax.random.normal(k_x, (C, H, W), dtype=jnp.float32)

    # Deterministic stand-ins for the np.random.random() calls in forward().
    p = 1.0
    eps = float(jax.random.uniform(k_eps, ()))          # in [0, 1) -> p > eps
    coefs = jax.random.uniform(k_coef, (C - 6,), dtype=jnp.float32)

    res = mix_channel_linear(x_tif, coefs, p=p, eps=eps)
    res = jax.block_until_ready(res)

    # Pure-JAX reference check.
    bicub, dh = x_tif[: C - 6], x_tif[6:]
    ref = coefs[:, None, None] * dh + (1.0 - coefs[:, None, None]) * bicub
    assert res.shape == (C - 6, H, W)
    assert jnp.allclose(res, ref, atol=1e-6, rtol=1e-6)

    print("KERNEL_OK")
</pallas_src>

<mosaic_0001>
module attributes {stable_mosaic.version = 11 : i64} {
  func.func @_mix_kernel(%arg0: i32, %arg1: i32, %arg2: memref<6xf32, #tpu.memory_space<smem>>, %arg3: memref<1x16x128xf32, #tpu.memory_space<vmem>>, %arg4: memref<1x16x128xf32, #tpu.memory_space<vmem>>, %arg5: memref<1x16x128xf32, #tpu.memory_space<vmem>>) attributes {dimension_semantics = [#tpu.dimension_semantics<parallel>, #tpu.dimension_semantics<parallel>], iteration_bounds = array<i64: 6, 1>, scalar_prefetch = 0 : i64, scratch_operands = 0 : i64, tpu.core_type = #tpu.core_type<tc>, window_params = [{transform_indices = @transform_0, window_bounds = array<i64: 6>}, {transform_indices = @transform_1, window_bounds = array<i64: 1, 16, 128>}, {transform_indices = @transform_2, window_bounds = array<i64: 1, 16, 128>}, {transform_indices = @transform_3, window_bounds = array<i64: 1, 16, 128>}]} {
    %0 = arith.index_cast %arg0 : i32 to index
    %1 = memref.load %arg2[%0] : memref<6xf32, #tpu.memory_space<smem>>
    %c0 = arith.constant 0 : index
    %c0_0 = arith.constant 0 : index
    %c0_1 = arith.constant 0 : index
    %2 = vector.load %arg3[%c0, %c0_0, %c0_1] : memref<1x16x128xf32, #tpu.memory_space<vmem>>, vector<1x16x128xf32>
    %c0_2 = arith.constant 0 : index
    %c0_3 = arith.constant 0 : index
    %c0_4 = arith.constant 0 : index
    %3 = vector.load %arg4[%c0_2, %c0_3, %c0_4] : memref<1x16x128xf32, #tpu.memory_space<vmem>>, vector<1x16x128xf32>
    %4 = arith.subf %3, %2 : vector<1x16x128xf32>
    %5 = vector.broadcast %1 : f32 to vector<1x16x128xf32>
    %6 = arith.mulf %5, %4 : vector<1x16x128xf32>
    %7 = arith.addf %2, %6 : vector<1x16x128xf32>
    %c0_5 = arith.constant 0 : index
    %c0_6 = arith.constant 0 : index
    %c0_7 = arith.constant 0 : index
    %8 = vector.load %arg5[%c0_5, %c0_6, %c0_7] : memref<1x16x128xf32, #tpu.memory_space<vmem>>, vector<1x16x128xf32>
    tpu.vector_store %arg5[%c0_5, %c0_6, %c0_7], %7 {strides = array<i32>} : memref<1x16x128xf32, #tpu.memory_space<vmem>>, vector<1x16x128xf32>,
    return
  }
  func.func @transform_0(%arg0: i32, %arg1: i32) -> i32 {
    %c0_i32 = arith.constant 0 : i32
    %c0_i32_0 = arith.constant 0 : i32
    return %c0_i32 : i32
  }
  func.func @transform_1(%arg0: i32, %arg1: i32) -> (i32, i32, i32) {
    %c0_i32 = arith.constant 0 : i32
    %c0_i32_0 = arith.constant 0 : i32
    return %arg0, %arg1, %c0_i32 : i32, i32, i32
  }
  func.func @transform_2(%arg0: i32, %arg1: i32) -> (i32, i32, i32) {
    %c6_i32 = arith.constant 6 : i32
    %0 = arith.addi %arg0, %c6_i32 : i32
    %c0_i32 = arith.constant 0 : i32
    %c0_i32_0 = arith.constant 0 : i32
    return %0, %arg1, %c0_i32 : i32, i32, i32
  }
  func.func @transform_3(%arg0: i32, %arg1: i32) -> (i32, i32, i32) {
    %c0_i32 = arith.constant 0 : i32
    %c0_i32_0 = arith.constant 0 : i32
    return %arg0, %arg1, %c0_i32 : i32, i32, i32
  }
}

</mosaic_0001>

<bundles_post_ra>
// kernel: tpu_custom_call.1
= control target key start
LH: loop header
LB: loop body
LE: loop exit
PB: predicated region body
PF: predicated region fallthrough
CT: control target
= control target key end

     0   :  { %s1084_s0 = inlined_call_operand.hbm [shape: f32[6], index: 0, kind: input, shape index: {}]   ;;  %s1085_s1 = inlined_call_operand.hbm [shape: f32[12,16,128], index: 1, kind: input, shape index: {}]   ;;  %s1086_s2 = inlined_call_operand.hbm [shape: f32[12,16,128], index: 2, kind: input, shape index: {}]   ;;  %s1087_s3 = inlined_call_operand.hbm [shape: f32[6,16,128], index: 3, kind: output, shape index: {}]  }
   0x1   :  { %1097 = sst [smem:[#allocation17_spill]] %s1084_s0 }
   0x2   :  { %1098 = sst [smem:[#allocation18_spill]] %s1085_s1 }
   0x3   :  { %8 = vsyncpa [#allocation5], 0 }
   0x4   :  { %9 = vsyncpa [#allocation3], 0 }
   0x5   :  { %11 = vsyncpa [#allocation3 + $0x1], 0 }
   0x6   :  { %12 = vsyncpa [#allocation8], 0 }
   0x7   :  { %14 = vsyncpa [#allocation8 + $0x1], 0 }
   0x8   :  { %15 = vsyncpa [#allocation4], 0 }
   0x9   :  { %17 = vsyncpa [#allocation4 + $0x1], 0  ;;  %s774_s12 = smov 0   ;;  %s776_s13 = smov 0  }
   0xa   :  { %s778_s14 = smov 0   ;;  %s780_s15 = smov 0  }
   0xb   :  { %s782_s16 = smov 0   ;;  %s784_s17 = smov 0  }
   0xc   :  { %s786_s18 = smov 0   ;;  %s788_s19 = smov 0  }
   0xd   :  { %s790_s20 = smov 0  }
   0xe LB: > { %s426_s21 = sadd.s32 4294967295, %s744_s20   ;;  %s427_s22 = sadd.s32 4294967294, %s744_s20   ;;  %s744_s20 = sphi %s790_s20, %s23_s20   ;;  %s740_s19 = sphi %s788_s19, %s1132_s19   ;;  %s736_s18 = sphi %s786_s18, %s1131_s18   ;;  %s732_s17 = sphi %s784_s17, %s1130_s17   ;;  %s728_s16 = sphi %s782_s16, %s1129_s16   ;;  %s724_s15 = sphi %s780_s15, %s1128_s15   ;;  %s720_s14 = sphi %s778_s14, %s1127_s14   ;;  %s716_s13 = sphi %s776_s13, %s1126_s13   ;;  %s712_s12 = sphi %s774_s12, %s1125_s12  }
   0xf   : > { %p72_p0 = scmp.ne.s32.totalorder %s732_s17, %s728_s16  ;;  %p1088_p1 = scmp.eq.s32.totalorder %s744_s20, 0 }
  0x10   : > { %p78_p2 = scmp.ne.s32.totalorder %s728_s16, %s724_s15  ;;  %p825_p3 = scmp.eq.s32.totalorder %s426_s21, 0 }
  0x11   : > { %p108_p4 = scmp.ne.s32.totalorder %s716_s13, %s712_s12  ;;  %p832_p5 = por %p1088_p1, %p72_p0 }
  0x12   : > { %s1099_s24 = scalar_select %p825_p3, 1, 0 }
  0x13   : > { %p134_p6 = scmp.eq.s32.totalorder %s426_s21, 5  ;;  %p838_p7 = por %p825_p3, %p78_p2 }
  0x14   : > { %p844_p8 = por %p108_p4, %p825_p3  ;;  %p140_p10 = scmp.eq.s32.totalorder %s427_s22, 5 }
  0x15   : > { %s1101_s26 = scalar_select %p838_p7, 1, 0 }
  0x16   : > { %s1102_s27 = scalar_select %p844_p8, 1, 0 }
  0x17   : > { %p848_p9 = por %p134_p6, %p72_p0  ;;  %p428_p11 = scmp.ge.s32.totalorder %s744_s20, 1 }
  0x18   : > { %p147_p12 = scmp.lt.s32.totalorder %s744_s20, 7  ;;  %p854_p13 = por %p140_p10, %p78_p2 }
  0x19   : > { %s1103_s28 = scalar_select %p848_p9, 1, 0 }
  0x1a   : > { %s1104_s29 = scalar_select %p854_p13, 1, 0 }
  0x1b   : > { %p858_p1 = pnand %p428_p11, %p147_p12  ;;  %s35_s4 = sadd.s32 1, %s740_s19 }
  0x1c   : > { %1105 = sst [smem:[#allocation14_spill]] %s1104_s29  ;;  %s88_s5 = sadd.s32 6, %s740_s19 }
  0x1d   : > { %p460_p4 = pneg %p858_p1  ;;  %p37_p6 = scmp.ge.s32.totalorder %s35_s4, 6 }
  0x1e   : > { %p1093_p9 = scmp.lt.s32.totalorder %s744_s20, 6  ;;  %s169_s6 = sand.u32 1, %s732_s17  }
  0x1f   : > { %p461_p0 = pnand %p460_p4, %p825_p3  ;;  %s1107_s0 = sld [smem:[#allocation17_spill]] }
  0x21   : > { %p558_p10 = pneg %p461_p0 }
  0x25   : > { %s556_s9 = scalar_lea.hbm %s1107_s0, 16 }
  0x26   : > { %p557_p2 = scmp.ne.s32.totalorder %s1107_s0, %s556_s9  ;;  %p563_p13 = scmp.lt.u32.totalorder %s556_s9, %s1107_s0 }
  0x28   : > { %p559_p11 = pnand %p558_p10, %p557_p2 }
  0x2a   : > { %p560_p12 = pneg %p559_p11 }
  0x2c   : > { %p565_p8 = pnand %p563_p13, %p560_p12 }
  0x2e   : > { %568 = shalt.err (!%p565_p8)
}
  0x2f   : > { %s746_s22 = smov [#allocation2]   ;;  %s1134_s4 = smov (%p37_p6, %s35_s4), 0 }
  0x30   : > { %463 = dma.hbm_to_smem (!%p461_p0), %s1107_s0, 16, %s746_s22, [#allocation5]  }
  0x31   : > { %1108 = sst [smem:[#allocation15_spill]] %s1134_s4  ;;  %s431_s7 = sshll.u32 %s169_s6, 4 }
  0x32   : > { %s447_s8 = sshll.u32 %s740_s19, 8  ;;  %s60_s9 = ssub.s32 %s740_s19, %s1134_s4 }
  0x33   : > { %s89_s10 = sadd.s32 6, %s1134_s4  ;;  %p63_p8 = scmp.eq.s32.totalorder %s60_s9, 0 }
  0x34   : > { %s888_s11 = ssub.s32 %s88_s5, %s89_s10  ;;  %s1109_s23 = sadd.s32 1, %s732_s17 }
  0x35   : > { %s894_s29 = scalar_select %p63_p8, %s732_s17, %s1109_s23  }
  0x36   : > { %s1111_s1 = sld [smem:[#allocation18_spill]]  ;;  %s173_s0 = scalar_lea.vmem [#allocation6], %s431_s7 }
  0x37   : > { %1110 = sst [smem:[#allocation16_spill]] %s894_s29  ;;  %s182_s4 = sshll.u32 %s173_s0, 4  ;;  %s903_s4 = int_to_ptr.vmem [resolvable:$true] %s182_s4 }
  0x38   : > { %p909_p4 = pnand %p1093_p9, %p832_p5  ;;  %s913_s9 = scalar_lea.sflag [#allocation3], %s169_s6 }
  0x3a   : > { %p571_p6 = pneg %p909_p4 }
  0x3c   : > { %s901_s22 = scalar_lea.hbm %s1111_s1, %s447_s8  ;;  %s574_s25 = scalar_lea.hbm %s1111_s1, 3072 }
  0x3d   : > { %s569_s10 = scalar_lea.hbm %s901_s22, 256  ;;  %p575_p5 = scmp.lt.u32.totalorder %s901_s22, %s1111_s1 }
  0x3e   : > { %p570_p0 = scmp.ne.s32.totalorder %s901_s22, %s569_s10  ;;  %p576_p11 = scmp.lt.u32.totalorder %s574_s25, %s569_s10 }
  0x3f   : > { %p578_p8 = scmp.lt.u32.totalorder %s569_s10, %s901_s22 }
  0x40   : > { %p572_p2 = pnand %p571_p6, %p570_p0  ;;  %p577_p12 = por %p576_p11, %p575_p5 }
  0x42   : > { %p573_p10 = pneg %p572_p2  ;;  %p579_p9 = por %p578_p8, %p577_p12 }
  0x44   : > { %p580_p13 = pnand %p579_p9, %p573_p10 }
  0x46   : > { %583 = shalt.err (!%p580_p13)
}
  0x47   : > { %s584_s6 = scalar_lea.vmem %s903_s4, 256  ;;  %s747_s21 = smov [#allocation6]  }
  0x48   : > { %p585_p0 = scmp.ne.s32.totalorder %s903_s4, %s584_s6  ;;  %s589_s0 = sshll.u32 %s747_s21, 4  ;;  %s590_s0 = int_to_ptr.vmem [resolvable:$false] %s589_s0 }
  0x49   : > { %s591_s7 = scalar_lea.vmem %s590_s0, 512  ;;  %p592_p3 = scmp.lt.s32.totalorder %s903_s4, %s590_s0 }
  0x4a   : > { %p587_p2 = pnand %p585_p0, %p571_p6  ;;  %p593_p5 = scmp.lt.s32.totalorder %s591_s7, %s584_s6 }
  0x4c   : > { %p588_p7 = pneg %p587_p2  ;;  %p594_p11 = por %p593_p5, %p592_p3 }
  0x4e   : > { %p595_p12 = pnand %p594_p11, %p588_p7 }
  0x50   : > { %598 = shalt.err (!%p595_p12)
}
  0x51   : > { %s748_s10 = smov 128   ;;  %s749_s25 = smov 8  }
  0x52   : > { %467 = dma.hbm_to_vmem [thread:$0]  (!%p909_p4), %s901_s22, 256, %s903_s4, %s913_s9, %s748_s10, %s748_s10, %s749_s25  }
  0x53   : > { %s348_s6 = scalar_lea.hbm %s1086_s2, %s447_s8  ;;  %s95_s21 = sadd.s32 1, %s720_s14 }
  0x54   : > { %p102_p3 = scmp.ne.s32.totalorder %s720_s14, %s716_s13  ;;  %p1113_p7 = scmp.eq.s32.totalorder %s888_s11, 0 }
  0x55   : > { %p1114_p9 = scmp.eq.s32.totalorder %s744_s20, 0  ;;  %s192_s7 = sand.u32 1, %s720_s14  }
  0x56   : > { %s955_s0 = scalar_select %p1113_p7, %s720_s14, %s95_s21  }
  0x57   : > { %p104_p13 = por %p102_p3, %p1114_p9  ;;  %s434_s1 = sshll.u32 %s192_s7, 4 }
  0x58   : > { %s960_s29 = scalar_lea.hbm %s348_s6, 1536  ;;  %s196_s4 = scalar_lea.vmem [#allocation7], %s434_s1 }
  0x59   : > { %s206_s22 = sshll.u32 %s196_s4, 4  ;;  %p1115_p4 = scmp.lt.s32.totalorder %s744_s20, 6  ;;  %s968_s22 = int_to_ptr.vmem [resolvable:$true] %s206_s22 }
  0x5a   : > { %s970_s8 = scalar_lea.sflag [#allocation8], %s192_s7  ;;  %s629_s11 = scalar_lea.hbm %s348_s6, 1792 }
  0x5b   : > { %p964_p6 = pnand %p1115_p4, %p104_p13  ;;  %p600_p10 = scmp.ne.s32.totalorder %s960_s29, %s629_s11 }
  0x5c   : > { %s604_s23 = scalar_lea.hbm %s1086_s2, 3072  ;;  %p605_p5 = scmp.lt.u32.totalorder %s960_s29, %s1086_s2 }
  0x5d   : > { %p601_p8 = pneg %p964_p6  ;;  %p606_p11 = scmp.lt.u32.totalorder %s604_s23, %s629_s11 }
  0x5e   : > { %p608_p3 = scmp.lt.u32.totalorder %s629_s11, %s960_s29 }
  0x5f   : > { %p602_p0 = pnand %p601_p8, %p600_p10  ;;  %p607_p12 = por %p606_p11, %p605_p5 }
  0x61   : > { %p603_p2 = pneg %p602_p0  ;;  %p609_p7 = por %p608_p3, %p607_p12 }
  0x63   : > { %p610_p9 = pnand %p609_p7, %p603_p2 }
  0x65   : > { %613 = shalt.err (!%p610_p9)
}
  0x66   : > { %s614_s6 = scalar_lea.vmem %s968_s22, 256  ;;  %s750_s7 = smov [#allocation7]  }
  0x67   : > { %p615_p13 = scmp.ne.s32.totalorder %s968_s22, %s614_s6  ;;  %s619_s4 = sshll.u32 %s750_s7, 4  ;;  %s620_s4 = int_to_ptr.vmem [resolvable:$false] %s619_s4 }
  0x68   : > { %s621_s1 = scalar_lea.vmem %s620_s4, 512  ;;  %p622_p0 = scmp.lt.s32.totalorder %s968_s22, %s620_s4 }
  0x69   : > { %p617_p4 = pnand %p615_p13, %p601_p8  ;;  %p623_p5 = scmp.lt.s32.totalorder %s621_s1, %s614_s6 }
  0x6b   : > { %p618_p10 = pneg %p617_p4  ;;  %p624_p11 = por %p623_p5, %p622_p0 }
  0x6d   : > { %p625_p12 = pnand %p624_p11, %p618_p10 }
  0x6f   : > { %628 = shalt.err (!%p625_p12)
}
  0x70   : > { %470 = dma.hbm_to_vmem [thread:$0]  (!%p964_p6), %s960_s29, 256, %s968_s22, %s970_s8, %s748_s10, %s748_s10, %s749_s25  }
  0x71   : > { %218 = sbr.rel (%p858_p1) target bundleno = 158 (0x9e), region = 32  ;;  %p1117_p8 = scmp.ne.s32.totalorder (!%p858_p1), %s1099_s24, 0 }
  0x78   : > { %695 = dma.done.wait (%p1117_p8), [#allocation5], 16  }
  0x79   : > { %697 = vsyncadd (%p1117_p8), [#allocation5], 4294967280  ;;  %s1007_s11 = sand.u32 1, %s728_s16   ;;  %p1118_p2 = scmp.ne.s32.totalorder %s1101_s26, 0 }
  0x7a   : > { %s439_s5 = sshll.u32 %s1007_s11, 4  ;;  %s225_s9 = scalar_lea.sflag [#allocation3], %s1007_s11 }
  0x7b   : > { %s228_s23 = scalar_lea.vmem [#allocation6], %s439_s5 }
  0x7c   : > { %699 = dma.done.wait (%p1118_p2), %s225_s9, 256  }
  0x7d   : > { %701 = vsyncadd (%p1118_p2), %s225_s9, 4294967040  ;;  %s233_s30 = sand.u32 1, %s716_s13   ;;  %p1119_p1 = scmp.ne.s32.totalorder %s1102_s27, 0 }
  0x7e   : > { %s440_s29 = sshll.u32 %s233_s30, 4  ;;  %s234_s24 = scalar_lea.sflag [#allocation8], %s233_s30 }
  0x7f   : > { %s237_s10 = scalar_lea.vmem [#allocation7], %s440_s29 }
  0x80   : > { %703 = dma.done.wait (%p1119_p1), %s234_s24, 256  }
  0x81   : > { %705 = vsyncadd (%p1119_p1), %s234_s24, 4294967040 }
  0x82   : > { %242 = sfence }
  0x83   : > { %s270_s25 = sld [smem:[#allocation2 + %s736_s18]]  ;;  %v271_v0 = vld [vmem:[%s228_s23] sm:$0xff]  ;;  %v272_v2 = vld [vmem:[%s228_s23 + $0x8] sm:$0xff]  ;;  %s265_s26 = scalar_lea.vmem [#allocation9], %s439_s5 }
  0x84   : > { %v273_v1 = vld [vmem:[%s237_s10] sm:$0xff]  ;;  %v274_v3 = vld [vmem:[%s237_s10 + $0x8] sm:$0xff]  ;;  %s300_s22 = sshll.u32 %s265_s26, 4  ;;  %s449_s8 = sshll.u32 %s736_s18, 8  ;;  %s1022_s22 = int_to_ptr.vmem [resolvable:$true] %s300_s22 }
  0x85   : > { %v275_v4 = vsub.f32 %v273_v1, %v271_v0  ;;  %v276_v5 = vsub.f32 %v274_v3, %v272_v2  ;;  %s1027_s21 = scalar_lea.hbm %s1087_s3, %s449_s8  ;;  %s285_s6 = scalar_lea.sflag [#allocation4], %s1007_s11 }
  0x86   : > { %s630_s7 = scalar_lea.vmem %s1022_s22, 256  ;;  %p1120_p3 = scmp.ne.s32.totalorder %s1103_s28, 0 }
  0x87   : > { %p631_p6 = scmp.ne.s32.totalorder %s1022_s22, %s630_s7  ;;  %s751_s18 = smov [#allocation9]  }
  0x88   : > { %s634_s4 = sshll.u32 %s751_s18, 4  ;;  %s635_s4 = int_to_ptr.vmem [resolvable:$false] %s634_s4 }
  0x89   : > { %v277_v6 = vstv %s270_s25  ;;  %p632_p7 = pnand %p631_p6, %p1120_p3  ;;  %s636_s1 = scalar_lea.vmem %s635_s4, 512 }
  0x8a   : > { %v278_v7 = vmul.f32 %v277_v6, %v275_v4  ;;  %v279_v8 = vmul.f32 %v277_v6, %v276_v5  ;;  %p637_p13 = scmp.lt.s32.totalorder %s1022_s22, %s635_s4  ;;  %p638_p4 = scmp.lt.s32.totalorder %s636_s1, %s630_s7 }
  0x8b   : > { %p633_p9 = pneg %p632_p7 }
  0x8c   : > { %v280_v9 = vadd.f32 %v278_v7, %v271_v0  ;;  %v281_v10 = vadd.f32 %v279_v8, %v272_v2  ;;  %p639_p10 = por %p638_p4, %p637_p13 }
  0x8e   : > { %282 = vst [vmem:[%s265_s26] sm:$0xff] %v280_v9  ;;  %283 = vst [vmem:[%s265_s26 + $0x8] sm:$0xff] %v281_v10  ;;  %p640_p0 = pnand %p639_p10, %p633_p9 }
  0x90   : > { %643 = shalt.err (!%p640_p0)
}
  0x91   : > { %s644_s5 = scalar_lea.hbm %s1027_s21, 256  ;;  %s648_s30 = scalar_lea.hbm %s1087_s3, 1536 }
  0x92   : > { %p645_p5 = scmp.ne.s32.totalorder %s1027_s21, %s644_s5  ;;  %p649_p8 = scmp.lt.u32.totalorder %s1027_s21, %s1087_s3 }
  0x93   : > { %p650_p2 = scmp.lt.u32.totalorder %s648_s30, %s644_s5  ;;  %p652_p6 = scmp.lt.u32.totalorder %s644_s5, %s1027_s21 }
  0x94   : > { %p646_p11 = pnand %p645_p5, %p1120_p3 }
  0x95   : > { %p651_p1 = por %p650_p2, %p649_p8 }
  0x96   : > { %p647_p12 = pneg %p646_p11 }
  0x97   : > { %p653_p7 = por %p652_p6, %p651_p1 }
  0x99   : > { %p654_p9 = pnand %p653_p7, %p647_p12 }
  0x9b   : > { %657 = shalt.err (!%p654_p9)
}
  0x9c   : > { %s752_s10 = smov 128   ;;  %s753_s25 = smov 8  }
  0x9d   : > { %458 = dma.vmem_to_hbm [thread:$0]  (%p1120_p3), %s1022_s22, 256, %s1027_s21, %s285_s6, %s752_s10, %s752_s10, %s753_s25  }
  0x9e PF: > { %s1121_s26 = sld [smem:[#allocation14_spill]]  ;;  %p478_p13 = scmp.ge.s32.totalorder %s744_s20, 2 }
  0x9f   : > { %s315_s8 = sand.u32 1, %s724_s15  }
  0xa0   : > { %s316_s27 = scalar_lea.sflag [#allocation4], %s315_s8 }
  0xa4   : > { %p1122_p4 = scmp.ne.s32.totalorder %s1121_s26, 0 }
  0xa6   : > { %p472_p10 = pnand %p478_p13, %p1122_p4 }
  0xa8   : > { %707 = dma.done.wait (!%p472_p10), %s316_s27, 256  }
  0xa9   : > { %709 = vsyncadd (!%p472_p10), %s316_s27, 4294967040  ;;  %s23_s20 = sadd.s32 1, %s744_s20   ;;  %s1123_s28 = sld [smem:[#allocation16_spill]] }
  0xaa   : > { %p20_p0 = scmp.ge.s32.totalorder %s23_s20, 8   ;;  %s1124_s11 = sld [smem:[#allocation15_spill]] }
  0xab   : > { %s1125_s12 = smov %s716_s13  ;;  %s1126_s13 = smov %s720_s14 }
  0xac   : > { %s1127_s14 = smov %s955_s0  ;;  %s1128_s15 = smov %s728_s16 }
  0xad   : > { %s1129_s16 = smov %s732_s17  ;;  %s1131_s18 = smov %s740_s19 }
  0xae   :  { %22 = sbr.rel (!%p20_p0) target bundleno = 14 (0xe), region = 95 }
  0xaf   : > { %s1130_s17 = smov %s1123_s28 }
  0xb0   : > { %s1132_s19 = smov %s1124_s11 }
  0xb5   :  { %321 = vsyncpa [#allocation3], 1 }
  0xb6   :  { %323 = vsyncpa [#allocation3 + $0x1], 1 }
  0xb7   :  { %324 = vsyncpa [#allocation8], 1 }
  0xb8   :  { %326 = vsyncpa [#allocation8 + $0x1], 1 }
  0xb9   :  { %327 = vsyncpa [#allocation4], 1 }
  0xba   :  { %329 = vsyncpa [#allocation4 + $0x1], 1 }
  0xbb   :  { %330 = vsyncpa [#allocation5], 1 }
  0xbc   :  { %332 = vsyncpa [#allocation5 + $0x1], 1 }

</bundles_post_ra>
